<compile_context>
chip_gen: v7x
topology: tpu7x:2x2x1
jax: 0.10.0
libtpu: 0.0.40
codegen_flags: <defaults>
</compile_context>

<pallas_src>
import math
from functools import partial

import jax
import jax.numpy as jnp
import numpy as np
from jax.experimental import pallas as pl
from jax.experimental.pallas import tpu as pltpu


def _round_up(x, m):
    return ((x + m - 1) // m) * m


def _largest_divisor_tile(dim, unit, cap, max_iters=512):
    """Largest t <= cap with t % unit == 0 and dim % t == 0, else None."""
    t = (min(cap, dim) // unit) * unit
    iters = 0
    while t >= unit and iters < max_iters:
        if dim % t == 0:
            return t
        t -= unit
        iters += 1
    return None


# -----------------------------------------------------------------------------
# Pallas kernel: tiled mean-pool + fused exit-gate / confidence epilogue.
# -----------------------------------------------------------------------------
def _taxus_router_kernel(x_ref, w1c_hbm, b1c_ref, w2d_ref, out_ref,
                         acc_ref, w1c_vmem, w_sem, *, true_seq_len, conf_col):
    s = pl.program_id(1)

    # ---- first sequence step of this batch tile ------------------------------
    @pl.when(s == 0)
    def _():
        acc_ref[...] = jnp.zeros_like(acc_ref)
        # The fused weight is only consumed in the epilogue, so its DMA is
        # issued here (single-buffered) and hidden behind the x streaming.
        pltpu.make_async_copy(w1c_hbm, w1c_vmem, w_sem).start()

    # ---- streaming sequence-sum (the HBM-bandwidth-bound part) ---------------
    x = x_ref[...].astype(jnp.float32)            # [TB, TS, H]
    acc_ref[...] += jnp.sum(x, axis=1)            # [TB, H]

    # ---- epilogue on the last sequence step -----------------------------------
    @pl.when(s == pl.num_programs(1) - 1)
    def _():
        pltpu.make_async_copy(w1c_hbm, w1c_vmem, w_sem).wait()

        pooled = acc_ref[...] * (1.0 / true_seq_len)              # [TB, H] f32

        # Fused first matmul (bf16 operands, f32 accumulate):
        #   cols [0, H4)      : gate hidden
        #   col  conf_col     : confidence logit (128-aligned lane)
        #   col  conf_col + 1 : constant-1 column (carries the b2 delta)
        h = jnp.dot(pooled.astype(jnp.bfloat16), w1c_vmem[...],
                    preferred_element_type=jnp.float32) + b1c_ref[...]
        conf_logit = h[:, conf_col:conf_col + 1]   # pre-ReLU confidence column
        hr = jnp.maximum(h, 0.0)

        # softmax([l0, l1]/T)[1] == sigmoid((l1 - l0)/T).  Only one output
        # column is nonzero, so the 2nd "matmul" is a VPU mul + lane reduction.
        d = jnp.sum(hr * w2d_ref[...], axis=-1, keepdims=True)    # [TB, 1]

        p1 = 1.0 / (1.0 + jnp.exp(-d))
        p0 = 1.0 - p1
        conf = 1.0 / (1.0 + jnp.exp(-conf_logit))
        should_exit = (p1 > 0.5).astype(jnp.float32)
        ent = -(p0 * jnp.log(p0 + 1e-8) + p1 * jnp.log(p1 + 1e-8))

        # Pack the tiny outputs into one lane-dense [TB, 128] slab.
        lane = jax.lax.broadcasted_iota(jnp.int32, out_ref.shape, 1)
        out = jnp.where(lane == 0, p0, 0.0)
        out = jnp.where(lane == 1, p1, out)
        out = jnp.where(lane == 2, conf, out)
        out = jnp.where(lane == 3, should_exit, out)
        out = jnp.where(lane == 4, ent, out)
        out_ref[...] = out


# -----------------------------------------------------------------------------
# Wrapper: weight folding, tile selection, pallas_call.
# -----------------------------------------------------------------------------
@partial(jax.jit, static_argnames=("temperature", "x_block_budget_bytes"))
def taxus_router(inputs, w1, b1, w2, b2, wc, bc, *, temperature,
                 x_block_budget_bytes=8 << 20):
    """Taxus exit-gate router.

    inputs: [B, S, H] float32 or bfloat16.
    Returns (exit_probs [B,2], confidence [B,1], should_exit [B,1], entropy [B,1]).
    """
    B, S, H = inputs.shape
    H4 = w1.shape[1]
    itemsize = jnp.dtype(inputs.dtype).itemsize

    # ---- fold parameters into lane-dense fused operands (staged under jit) ---
    conf_col = max(128, _round_up(H4, 128))    # 128-aligned confidence lane
    const_col = conf_col + 1                   # constant-1 column for b2 delta
    P1 = conf_col + 128

    w1c = jnp.zeros((H, P1), jnp.float32)
    w1c = w1c.at[:, :H4].set(w1.astype(jnp.float32))
    w1c = w1c.at[:, conf_col].set(wc.astype(jnp.float32))
    w1c = w1c.astype(jnp.bfloat16)             # bf16: native MXU, half the VMEM

    b1c = jnp.zeros((1, P1), jnp.float32)
    b1c = b1c.at[0, :H4].set(b1.astype(jnp.float32))
    b1c = b1c.at[0, conf_col].set(bc.astype(jnp.float32)[0])
    b1c = b1c.at[0, const_col].set(1.0)

    inv_t = 1.0 / float(temperature)
    w2d = jnp.zeros((1, P1), jnp.float32)
    w2d = w2d.at[0, :H4].set((w2[:, 1] - w2[:, 0]).astype(jnp.float32) * inv_t)
    w2d = w2d.at[0, const_col].set((b2[1] - b2[0]).astype(jnp.float32) * inv_t)

    # ---- VMEM budgets ----------------------------------------------------------
    vmem_cap = 48 << 20                         # safe on v7x (64 MiB physical)
    try:
        phys = int(pltpu.get_tpu_info().vmem_capacity_bytes)
        vmem_cap = min(max(phys - (16 << 20), 32 << 20), 96 << 20)
    except Exception:
        pass
    weight_bytes = H * P1 * 2                   # single-buffered bf16 scratch
    avail_for_x = max(vmem_cap - weight_bytes - (6 << 20), 1 << 20)
    budget = min(int(x_block_budget_bytes), avail_for_x // 2)   # per x buffer

    # ---- tile selection ---------------------------------------------------------
    sub_unit = {4: 8, 2: 16, 1: 32}.get(itemsize, 8)

    if B < 16:
        TB, Bp = B, B                           # single small full-extent tile
    else:
        cap = min(256, max(8, (B // 2) // 8 * 8))       # >=2 tiles -> megacore
        cap = min(cap, max(8, budget // max(sub_unit * H * itemsize, 1) // 8 * 8))
        TB = _largest_divisor_tile(B, 8, cap)
        if TB is None:                           # awkward B: pad, don't blow VMEM
            TB = cap
        Bp = _round_up(B, TB)

    per_row_bytes = max(TB * H * itemsize, 1)
    max_ts = max((budget // per_row_bytes) // sub_unit * sub_unit, sub_unit)
    if S <= max_ts:
        TS, Sp = S, S                            # full-extent block (always legal)
    else:
        TS = _largest_divisor_tile(S, sub_unit, max_ts)
        if TS is None:                           # awkward S: zero-pad (sum-safe)
            TS = max_ts
        Sp = _round_up(S, TS)

    x = inputs
    if Bp != B or Sp != S:
        x = jnp.pad(x, ((0, Bp - B), (0, Sp - S), (0, 0)))
    grid = (Bp // TB, Sp // TS)

    # ---- cost / VMEM hints ------------------------------------------------------
    need = (2 * TB * TS * H * itemsize           # x, double-buffered
            + weight_bytes                       # w1c scratch (single copy)
            + 2 * 2 * P1 * 4                     # b1c + w2d, double-buffered
            + 2 * TB * 128 * 4                   # out, double-buffered
            + TB * H * 4)                        # f32 accumulator
    vmem_limit = int(min(max(need * 13 // 10 + (2 << 20), 32 << 20), vmem_cap))

    cost = pl.CostEstimate(
        flops=int(Bp * Sp * H + 2 * Bp * H * P1 + 2 * Bp * P1),
        transcendentals=int(4 * Bp),
        bytes_accessed=int(Bp * Sp * H * itemsize + weight_bytes + 3 * P1 * 4
                           + Bp * 128 * 4),
    )

    kernel = partial(_taxus_router_kernel, true_seq_len=S, conf_col=conf_col)

    slab = pl.pallas_call(
        kernel,
        grid_spec=pltpu.PrefetchScalarGridSpec(
            num_scalar_prefetch=0,
            grid=grid,
            in_specs=[
                pl.BlockSpec((TB, TS, H), lambda b, s: (b, s, 0)),
                # Epilogue-only weight: stays in HBM; manual single-buffered
                # DMA in-kernel instead of a 2x-buffered pipeline slot.
                pl.BlockSpec(memory_space=pl.ANY),
                pl.BlockSpec((1, P1), lambda b, s: (0, 0)),
                pl.BlockSpec((1, P1), lambda b, s: (0, 0)),
            ],
            out_specs=pl.BlockSpec((TB, 128), lambda b, s: (b, 0)),
            scratch_shapes=[
                pltpu.VMEM((TB, H), jnp.float32),     # sequence-sum accumulator
                pltpu.VMEM((H, P1), jnp.bfloat16),    # single-buffered weights
                pltpu.SemaphoreType.DMA(()),          # weight-DMA semaphore
            ],
        ),
        out_shape=jax.ShapeDtypeStruct((Bp, 128), jnp.float32),
        compiler_params=pltpu.CompilerParams(
            dimension_semantics=("parallel", "arbitrary"),
            vmem_limit_bytes=vmem_limit,
        ),
        cost_estimate=cost,
    )(x, w1c, b1c, w2d)

    probs = slab[:B, 0:2]          # [p(stay), p(exit)]
    conf = slab[:B, 2:3]
    should_exit = slab[:B, 3:4]
    ent = slab[:B, 4:5]
    return probs, conf, should_exit, ent


# -----------------------------------------------------------------------------
# Deterministic parameter init, following Taxus.__init__ shapes / bias scheme.
# -----------------------------------------------------------------------------
def init_taxus_params(key, hidden_size, depth, target_depth_ratio, min_exit_layer):
    H = hidden_size
    H4 = H // 4
    target_layer = int(target_depth_ratio * depth)
    keys = jax.random.split(key, 2 * depth + 1)

    gates = []
    for i in range(depth):
        k1, k2 = keys[2 * i], keys[2 * i + 1]
        w1 = jax.random.normal(k1, (H, H4), jnp.float32) / math.sqrt(H)
        b1 = jnp.zeros((H4,), jnp.float32)
        w2 = jax.random.normal(k2, (H4, 2), jnp.float32) / math.sqrt(H4)
        if i >= min_exit_layer:
            dist = abs(i - target_layer) / depth
            exit_bias = 2.0 * (1.0 - 2.0 * dist)
            b2 = jnp.array([-exit_bias, exit_bias], jnp.float32)
        else:
            b2 = jnp.zeros((2,), jnp.float32)
        gates.append((w1, b1, w2, b2))

    wc = jax.random.normal(keys[-1], (H,), jnp.float32) / math.sqrt(H)
    bc = jnp.zeros((1,), jnp.float32)
    layer_costs = jnp.linspace(0.1, 0.5, depth).astype(jnp.float32)
    return dict(gates=gates, wc=wc, bc=bc, layer_costs=layer_costs)


# -----------------------------------------------------------------------------
# Full forward pass (eval mode), mirroring Taxus.forward.
# -----------------------------------------------------------------------------
def taxus_forward(params, layer_fn, inputs, current_depth, *, depth,
                  min_exit_layer=1, target_depth_ratio=0.5, temperature=1.0,
                  entropy_weight=0.01, usage_weight=0.1):
    losses = {}

    # current_depth < min_exit_layer: always run the layer, no routing.
    if current_depth < min_exit_layer:
        outputs, layer_loss = layer_fn(inputs)
        losses['layer'] = layer_loss
        return outputs, losses

    w1, b1, w2, b2 = params['gates'][current_depth]
    probs, conf, should_exit, ent = taxus_router(
        inputs, w1, b1, w2, b2, params['wc'], params['bc'],
        temperature=temperature)

    entropy = jnp.mean(ent)
    not_exit_mean = jnp.mean(1.0 - should_exit)
    exit_mean = jnp.mean(should_exit)
    conf_mean = jnp.mean(conf)
    avg_exit_prob = jnp.mean(probs[:, 1])

    losses['taxus_entropy'] = entropy_weight * jnp.clip(-entropy, 0.0, 10.0)

    r = (current_depth + 1) / depth
    if r > target_depth_ratio:
        usage_dev = 2.0 * (r - target_depth_ratio) ** 2
    else:
        usage_dev = 0.5 * (r - target_depth_ratio) ** 2
    losses['taxus_usage'] = usage_weight * usage_dev * not_exit_mean
    losses['taxus_confidence'] = 0.1 * jnp.clip(conf_mean * r, 0.0, 2.0)

    layer_cost = params['layer_costs'][current_depth]
    losses['taxus_cost'] = jnp.clip(layer_cost * not_exit_mean, 0.0, 1.0)
    losses['taxus_continue_penalty'] = 0.5 * not_exit_mean * r

    target_layer = int(target_depth_ratio * depth)
    dist = abs(current_depth - target_layer) / depth
    losses['taxus_target_bonus'] = 0.5 * (1.0 - exit_mean * (1.0 - dist))

    # TODO(synk): training-only paths (gumbel-softmax hard sampling, budget loss,
    # exit_mask blending of inputs/outputs) are stochastic / training-only; this
    # implements the deterministic eval-mode forward.
    losses['taxus_should_exit'] = (avg_exit_prob > 0.5).astype(jnp.float32)

    # eval-mode early exit: if every sample wants to exit, skip the layer.
    all_exit = jnp.all(should_exit > 0.5)

    def _exit_branch(_):
        # layer skipped -> zero layer loss (torch simply omits the key)
        return inputs, jnp.float32(0.0)

    def _layer_branch(_):
        return layer_fn(inputs)

    outputs, layer_loss = jax.lax.cond(all_exit, _exit_branch, _layer_branch,
                                       operand=None)
    losses['layer'] = layer_loss
    return outputs, losses


# -----------------------------------------------------------------------------
# Stub decoder layer (the `layer` argument is external to Taxus itself).
# -----------------------------------------------------------------------------
def make_stub_layer(key, hidden_size):
    wl = jax.random.normal(key, (hidden_size, hidden_size), jnp.float32) * 0.02

    def layer_fn(x):
        out = x + jnp.tanh(x @ wl)
        return out, jnp.float32(0.0)

    return layer_fn


if __name__ == "__main__":
    key = jax.random.PRNGKey(0)
    B, S, H, DEPTH = 16, 64, 128, 6
    k_in, k_p, k_l = jax.random.split(key, 3)

    inputs = jax.random.normal(k_in, (B, S, H), jnp.float32)
    params = init_taxus_params(k_p, hidden_size=H, depth=DEPTH,
                               target_depth_ratio=0.5, min_exit_layer=1)
    layer_fn = make_stub_layer(k_l, H)

    # Full forward pass (eval mode), mirroring Taxus.forward for layer 3.
    outputs, losses = taxus_forward(params, layer_fn, inputs, current_depth=3,
                                    depth=DEPTH, min_exit_layer=1,
                                    target_depth_ratio=0.5, temperature=1.0,
                                    entropy_weight=0.01, usage_weight=0.1)
    jax.block_until_ready(outputs)
    jax.block_until_ready(losses)

    # Direct router checks against a plain-JAX reference.  A deliberately small
    # x-block budget exercises the multi-step streaming / hidden-weight-DMA
    # path, and the second shape exercises the awkward-shape padding path.
    w1, b1, w2, b2 = params['gates'][3]

    def reference(x):
        pooled = jnp.mean(x.astype(jnp.float32), axis=1)
        hh = jnp.maximum(pooled @ w1 + b1, 0.0)
        logits = hh @ w2 + b2
        probs = jax.nn.softmax(logits, axis=-1)
        conf = jax.nn.sigmoid(pooled @ params['wc'][:, None] + params['bc'])
        ent = -jnp.sum(probs * jnp.log(probs + 1e-8), axis=-1, keepdims=True)
        return probs, conf, ent

    for shape in [(B, S, H), (12, 60, H)]:
        xs = jax.random.normal(jax.random.PRNGKey(1), shape, jnp.float32)
        probs, conf, se, ent = taxus_router(
            xs, w1, b1, w2, b2, params['wc'], params['bc'],
            temperature=1.0, x_block_budget_bytes=32 * 1024)
        jax.block_until_ready((probs, conf, se, ent))
        rp, rc, re = reference(xs)
        np.testing.assert_allclose(np.asarray(probs), np.asarray(rp), atol=3e-2)
        np.testing.assert_allclose(np.asarray(conf), np.asarray(rc), atol=3e-2)
        np.testing.assert_allclose(np.asarray(ent), np.asarray(re), atol=5e-2)

    print("KERNEL_OK")
</pallas_src>

<mosaic_0001>
module attributes {stable_mosaic.version = 11 : i64} {
  func.func @_taxus_router_kernel(%arg0: i32, %arg1: i32, %arg2: memref<8x64x128xf32, #tpu.memory_space<vmem>>, %arg3: memref<128x256xbf16, #tpu.memory_space<any>>, %arg4: memref<1x256xf32, #tpu.memory_space<vmem>>, %arg5: memref<1x256xf32, #tpu.memory_space<vmem>>, %arg6: memref<8x128xf32, #tpu.memory_space<vmem>>, %arg7: memref<8x128xf32, #tpu.memory_space<vmem>>, %arg8: memref<128x256xbf16, #tpu.memory_space<vmem>>, %arg9: memref<!tpu.dma_semaphore, #tpu.memory_space<semaphore_mem>>) attributes {dimension_semantics = [#tpu.dimension_semantics<parallel>, #tpu.dimension_semantics<arbitrary>], iteration_bounds = array<i64: 2, 1>, scalar_prefetch = 0 : i64, scratch_operands = 3 : i64, tpu.core_type = #tpu.core_type<tc>, window_params = [{transform_indices = @transform_0, window_bounds = array<i64: 8, 64, 128>}, {}, {pipeline_mode = #tpu.pipeline_mode<synchronous>, transform_indices = @transform_2, window_bounds = array<i64: 1, 256>}, {pipeline_mode = #tpu.pipeline_mode<synchronous>, transform_indices = @transform_3, window_bounds = array<i64: 1, 256>}, {transform_indices = @transform_4, window_bounds = array<i64: 8, 128>}]} {
    %c0_i32 = arith.constant 0 : i32
    %0 = arith.cmpi eq, %arg1, %c0_i32 : i32
    %1 = arith.extui %0 : i1 to i32
    %c0_i32_0 = arith.constant 0 : i32
    %2 = arith.cmpi ne, %1, %c0_i32_0 : i32
    scf.if %2 {
      %cst_9 = arith.constant 0.000000e+00 : f32
      %11 = vector.broadcast %cst_9 : f32 to vector<8x128xf32>
      %c0_10 = arith.constant 0 : index
      %c0_11 = arith.constant 0 : index
      %12 = vector.load %arg7[%c0_10, %c0_11] : memref<8x128xf32, #tpu.memory_space<vmem>>, vector<8x128xf32>
      tpu.vector_store %arg7[%c0_10, %c0_11], %11 {strides = array<i32>} : memref<8x128xf32, #tpu.memory_space<vmem>>, vector<8x128xf32>,
      tpu.enqueue_dma source(%arg3 : memref<128x256xbf16, #tpu.memory_space<any>>) target(%arg8 : memref<128x256xbf16, #tpu.memory_space<vmem>>) target_semaphore(%arg9 : memref<!tpu.dma_semaphore, #tpu.memory_space<semaphore_mem>>)
    } else {
    }
    %c0 = arith.constant 0 : index
    %c0_1 = arith.constant 0 : index
    %c0_2 = arith.constant 0 : index
    %3 = vector.load %arg2[%c0, %c0_1, %c0_2] : memref<8x64x128xf32, #tpu.memory_space<vmem>>, vector<8x64x128xf32>
    %c0_3 = arith.constant 0 : index
    %c0_4 = arith.constant 0 : index
    %4 = vector.load %arg7[%c0_3, %c0_4] : memref<8x128xf32, #tpu.memory_space<vmem>>, vector<8x128xf32>
    %cst = arith.constant dense<0.000000e+00> : vector<8x128xf32>
    %5 = vector.multi_reduction <add>, %3, %cst [1] : vector<8x64x128xf32> to vector<8x128xf32>
    %6 = arith.addf %4, %5 : vector<8x128xf32>
    %c0_5 = arith.constant 0 : index
    %c0_6 = arith.constant 0 : index
    %7 = vector.load %arg7[%c0_5, %c0_6] : memref<8x128xf32, #tpu.memory_space<vmem>>, vector<8x128xf32>
    tpu.vector_store %arg7[%c0_5, %c0_6], %6 {strides = array<i32>} : memref<8x128xf32, #tpu.memory_space<vmem>>, vector<8x128xf32>,
    %c0_i32_7 = arith.constant 0 : i32
    %8 = arith.cmpi eq, %arg1, %c0_i32_7 : i32
    %9 = arith.extui %8 : i1 to i32
    %c0_i32_8 = arith.constant 0 : i32
    %10 = arith.cmpi ne, %9, %c0_i32_8 : i32
    scf.if %10 {
      tpu.wait_dma2 semaphore(%arg9 : memref<!tpu.dma_semaphore, #tpu.memory_space<semaphore_mem>>) src(%arg3 : memref<128x256xbf16, #tpu.memory_space<any>>) dst(%arg8 : memref<128x256xbf16, #tpu.memory_space<vmem>>)
      %c0_9 = arith.constant 0 : index
      %c0_10 = arith.constant 0 : index
      %11 = vector.load %arg7[%c0_9, %c0_10] : memref<8x128xf32, #tpu.memory_space<vmem>>, vector<8x128xf32>
      %cst_11 = arith.constant 1.562500e-02 : f32
      %12 = vector.broadcast %cst_11 : f32 to vector<8x128xf32>
      %13 = arith.mulf %11, %12 : vector<8x128xf32>
      %14 = arith.truncf %13 : vector<8x128xf32> to vector<8x128xbf16>
      %c0_12 = arith.constant 0 : index
      %c0_13 = arith.constant 0 : index
      %15 = vector.load %arg8[%c0_12, %c0_13] : memref<128x256xbf16, #tpu.memory_space<vmem>>, vector<128x256xbf16>
      %cst_14 = arith.constant dense<0.000000e+00> : vector<8x256xf32>
      %16 = tpu.matmul %14, %15, %cst_14 {dimension_numbers = #tpu.dot_dimension_numbers<[1], [0], [0], [1], [0, 0, 1, 1], [], []>} : vector<8x128xbf16>, vector<128x256xbf16>, vector<8x256xf32> -> vector<8x256xf32>
      %c0_15 = arith.constant 0 : index
      %c0_16 = arith.constant 0 : index
      %17 = vector.load %arg4[%c0_15, %c0_16] : memref<1x256xf32, #tpu.memory_space<vmem>>, vector<1x256xf32>
      %18 = vector.broadcast %17 : vector<1x256xf32> to vector<8x256xf32>
      %19 = arith.addf %16, %18 : vector<8x256xf32>
      %20 = vector.extract_strided_slice %19 {offsets = [0, 128], sizes = [8, 1], strides = [1, 1]} : vector<8x256xf32> to vector<8x1xf32>
      %cst_17 = arith.constant 0.000000e+00 : f32
      %21 = vector.broadcast %cst_17 : f32 to vector<8x256xf32>
      %22 = arith.maximumf %19, %21 : vector<8x256xf32>
      %c0_18 = arith.constant 0 : index
      %c0_19 = arith.constant 0 : index
      %23 = vector.load %arg5[%c0_18, %c0_19] : memref<1x256xf32, #tpu.memory_space<vmem>>, vector<1x256xf32>
      %24 = vector.broadcast %23 : vector<1x256xf32> to vector<8x256xf32>
      %25 = arith.mulf %22, %24 : vector<8x256xf32>
      %cst_20 = arith.constant dense<0.000000e+00> : vector<8xf32>
      %26 = vector.multi_reduction <add>, %25, %cst_20 [1] : vector<8x256xf32> to vector<8xf32>
      %27 = vector.shape_cast %26 : vector<8xf32> to vector<8x1xf32>
      %cst_21 = arith.constant 0.000000e+00 : f32
      %28 = vector.broadcast %cst_21 : f32 to vector<8x1xf32>
      %29 = arith.subf %28, %27 : vector<8x1xf32>
      %30 = math.exp %29 : vector<8x1xf32>
      %cst_22 = arith.constant 1.000000e+00 : f32
      %31 = vector.broadcast %cst_22 : f32 to vector<8x1xf32>
      %32 = arith.addf %31, %30 : vector<8x1xf32>
      %cst_23 = arith.constant 1.000000e+00 : f32
      %33 = vector.broadcast %cst_23 : f32 to vector<8x1xf32>
      %34 = arith.divf %33, %32 : vector<8x1xf32>
      %cst_24 = arith.constant 1.000000e+00 : f32
      %35 = vector.broadcast %cst_24 : f32 to vector<8x1xf32>
      %36 = arith.subf %35, %34 : vector<8x1xf32>
      %cst_25 = arith.constant 0.000000e+00 : f32
      %37 = vector.broadcast %cst_25 : f32 to vector<8x1xf32>
      %38 = arith.subf %37, %20 : vector<8x1xf32>
      %39 = math.exp %38 : vector<8x1xf32>
      %cst_26 = arith.constant 1.000000e+00 : f32
      %40 = vector.broadcast %cst_26 : f32 to vector<8x1xf32>
      %41 = arith.addf %40, %39 : vector<8x1xf32>
      %cst_27 = arith.constant 1.000000e+00 : f32
      %42 = vector.broadcast %cst_27 : f32 to vector<8x1xf32>
      %43 = arith.divf %42, %41 : vector<8x1xf32>
      %cst_28 = arith.constant 5.000000e-01 : f32
      %44 = vector.broadcast %cst_28 : f32 to vector<8x1xf32>
      %45 = arith.cmpf ogt, %34, %44 : vector<8x1xf32>
      %46 = arith.extui %45 : vector<8x1xi1> to vector<8x1xi32>
      %47 = arith.sitofp %46 : vector<8x1xi32> to vector<8x1xf32>
      %cst_29 = arith.constant 9.99999993E-9 : f32
      %48 = vector.broadcast %cst_29 : f32 to vector<8x1xf32>
      %49 = arith.addf %36, %48 : vector<8x1xf32>
      %50 = math.log %49 : vector<8x1xf32>
      %51 = arith.mulf %36, %50 : vector<8x1xf32>
      %cst_30 = arith.constant 9.99999993E-9 : f32
      %52 = vector.broadcast %cst_30 : f32 to vector<8x1xf32>
      %53 = arith.addf %34, %52 : vector<8x1xf32>
      %54 = math.log %53 : vector<8x1xf32>
      %55 = arith.mulf %34, %54 : vector<8x1xf32>
      %56 = arith.addf %51, %55 : vector<8x1xf32>
      %cst_31 = arith.constant 0.000000e+00 : f32
      %57 = vector.broadcast %cst_31 : f32 to vector<8x1xf32>
      %58 = arith.subf %57, %56 : vector<8x1xf32>
      %59 = tpu.iota {dimensions = array<i32: 1>} : vector<8x128xi32>
      %c0_i32_32 = arith.constant 0 : i32
      %60 = vector.broadcast %c0_i32_32 : i32 to vector<8x128xi32>
      %61 = arith.cmpi eq, %59, %60 : vector<8x128xi32>
      %cst_33 = arith.constant 0.000000e+00 : f32
      %62 = vector.shape_cast %36 : vector<8x1xf32> to vector<8x1xf32>
      %63 = vector.broadcast %62 : vector<8x1xf32> to vector<8x128xf32>
      %64 = vector.broadcast %cst_33 : f32 to vector<8x128xf32>
      %65 = arith.select %61, %63, %64 : vector<8x128xi1>, vector<8x128xf32>
      %c1_i32 = arith.constant 1 : i32
      %66 = vector.broadcast %c1_i32 : i32 to vector<8x128xi32>
      %67 = arith.cmpi eq, %59, %66 : vector<8x128xi32>
      %68 = vector.shape_cast %34 : vector<8x1xf32> to vector<8x1xf32>
      %69 = vector.broadcast %68 : vector<8x1xf32> to vector<8x128xf32>
      %70 = arith.select %67, %69, %65 : vector<8x128xi1>, vector<8x128xf32>
      %c2_i32 = arith.constant 2 : i32
      %71 = vector.broadcast %c2_i32 : i32 to vector<8x128xi32>
      %72 = arith.cmpi eq, %59, %71 : vector<8x128xi32>
      %73 = vector.shape_cast %43 : vector<8x1xf32> to vector<8x1xf32>
      %74 = vector.broadcast %73 : vector<8x1xf32> to vector<8x128xf32>
      %75 = arith.select %72, %74, %70 : vector<8x128xi1>, vector<8x128xf32>
      %c3_i32 = arith.constant 3 : i32
      %76 = vector.broadcast %c3_i32 : i32 to vector<8x128xi32>
      %77 = arith.cmpi eq, %59, %76 : vector<8x128xi32>
      %78 = vector.shape_cast %47 : vector<8x1xf32> to vector<8x1xf32>
      %79 = vector.broadcast %78 : vector<8x1xf32> to vector<8x128xf32>
      %80 = arith.select %77, %79, %75 : vector<8x128xi1>, vector<8x128xf32>
      %c4_i32 = arith.constant 4 : i32
      %81 = vector.broadcast %c4_i32 : i32 to vector<8x128xi32>
      %82 = arith.cmpi eq, %59, %81 : vector<8x128xi32>
      %83 = vector.shape_cast %58 : vector<8x1xf32> to vector<8x1xf32>
      %84 = vector.broadcast %83 : vector<8x1xf32> to vector<8x128xf32>
      %85 = arith.select %82, %84, %80 : vector<8x128xi1>, vector<8x128xf32>
      %c0_34 = arith.constant 0 : index
      %c0_35 = arith.constant 0 : index
      %86 = vector.load %arg6[%c0_34, %c0_35] : memref<8x128xf32, #tpu.memory_space<vmem>>, vector<8x128xf32>
      tpu.vector_store %arg6[%c0_34, %c0_35], %85 {strides = array<i32>} : memref<8x128xf32, #tpu.memory_space<vmem>>, vector<8x128xf32>,
    } else {
    }
    return
  }
  func.func @transform_0(%arg0: i32, %arg1: i32) -> (i32, i32, i32) {
    %c0_i32 = arith.constant 0 : i32
    %c0_i32_0 = arith.constant 0 : i32
    return %arg0, %arg1, %c0_i32 : i32, i32, i32
  }
  func.func @transform_2(%arg0: i32, %arg1: i32) -> (i32, i32) {
    %c0_i32 = arith.constant 0 : i32
    %c0_i32_0 = arith.constant 0 : i32
    %c0_i32_1 = arith.constant 0 : i32
    return %c0_i32, %c0_i32_0 : i32, i32
  }
  func.func @transform_3(%arg0: i32, %arg1: i32) -> (i32, i32) {
    %c0_i32 = arith.constant 0 : i32
    %c0_i32_0 = arith.constant 0 : i32
    %c0_i32_1 = arith.constant 0 : i32
    return %c0_i32, %c0_i32_0 : i32, i32
  }
  func.func @transform_4(%arg0: i32, %arg1: i32) -> (i32, i32) {
    %c0_i32 = arith.constant 0 : i32
    %c0_i32_0 = arith.constant 0 : i32
    return %arg0, %c0_i32 : i32, i32
  }
}

</mosaic_0001>

<bundles_post_ra>
// kernel: taxus_router.1
= control target key start
LH: loop header
LB: loop body
LE: loop exit
PB: predicated region body
PF: predicated region fallthrough
CT: control target
= control target key end

     0   :  { %9 = vsyncpa [#allocation6], 0  ;;  %s1300_s0 = inlined_call_operand.hbm [shape: f32[16,64,128], index: 0, kind: input, shape index: {}]   ;;  %s1301_s1 = inlined_call_operand.vmem [shape: bf16[128,256], index: 1, kind: input, shape index: {}]   ;;  %s1302_s2 = inlined_call_operand.vmem [shape: f32[1,256], index: 2, kind: input, shape index: {}]   ;;  %s1303_s3 = inlined_call_operand.vmem [shape: f32[1,256], index: 3, kind: input, shape index: {}]   ;;  %s1304_s4 = inlined_call_operand.vmem [shape: f32[16,128], index: 4, kind: output, shape index: {}]  }
   0x1   :  { %11 = vsyncpa [#allocation6 + $0x1], 0  ;;  %s1026_s15 = smov 0   ;;  %s1028_s16 = smov 0  }
   0x2   :  { %s1030_s17 = smov 0   ;;  %s1032_s18 = smov 0  }
   0x3   :  { %s1034_s19 = smov 0   ;;  %s1036_s20 = smov 0  }
   0x4 LB: > { %s823_s21 = sadd.s32 4294967295, %s994_s20   ;;  %s29_s22 = sadd.s32 1, %s990_s19  ;;  %s994_s20 = sphi %s1036_s20, %s17_s20   ;;  %s990_s19 = sphi %s1034_s19, %s1312_s19   ;;  %s986_s18 = sphi %s1032_s18, %s1311_s18   ;;  %s982_s17 = sphi %s1030_s17, %s1310_s17   ;;  %s978_s16 = sphi %s1028_s16, %s1309_s16   ;;  %s974_s15 = sphi %s1026_s15, %s1308_s15  }
   0x5   : > { %p31_p0 = scmp.ge.s32.totalorder %s29_s22, 2  ;;  %s38_s23 = sadd.s32 1, %s982_s17 }
   0x6   : > { %p45_p1 = scmp.ne.s32.totalorder %s982_s17, %s978_s16  ;;  %p46_p2 = scmp.eq.s32.totalorder %s994_s20, 0 }
   0x7   : > { %s1314_s22 = smov (%p31_p0, %s29_s22), 0  ;;  %p51_p4 = scmp.ne.s32.totalorder %s978_s16, %s974_s15 }
   0x8   : > { %p1062_p3 = por %p46_p2, %p45_p1  ;;  %s33_s25 = ssub.s32 %s990_s19, %s1314_s22 }
   0x9   : > { %p52_p5 = scmp.eq.s32.totalorder %s823_s21, 0  ;;  %p36_p6 = scmp.eq.s32.totalorder %s33_s25, 0 }
   0xa   : > { %p846_p8 = scmp.lt.s32.totalorder %s994_s20, 2  ;;  %s149_s28 = sand.u32 1, %s982_s17  }
   0xb   : > { %p1069_p7 = por %p52_p5, %p51_p4  ;;  %s839_s29 = sshll.u32 %s990_s19, 13 }
   0xc   : > { %s1075_s27 = scalar_select %p36_p6, %s982_s17, %s38_s23  }
   0xd   : > { %s827_s30 = sshll.u32 %s149_s28, 9  ;;  %s1082_s7 = scalar_lea.hbm %s1300_s0, %s839_s29 }
   0xe   : > { %s153_s8 = scalar_lea.vmem [#allocation5], %s827_s30  ;;  %p1086_p9 = pnand %p846_p8, %p1062_p3 }
   0xf   : > { %s163_s9 = sshll.u32 %s153_s8, 4  ;;  %s1092_s11 = scalar_lea.sflag [#allocation6], %s149_s28  ;;  %s1090_s9 = int_to_ptr.vmem [resolvable:$true] %s163_s9 }
  0x10   : > { %s912_s12 = scalar_lea.hbm %s1082_s7, 8192  ;;  %p914_p11 = pneg %p1086_p9 }
  0x11   : > { %p913_p10 = scmp.ne.s32.totalorder %s1082_s7, %s912_s12  ;;  %s917_s15 = scalar_lea.hbm %s1300_s0, 16384 }
  0x12   : > { %p918_p0 = scmp.lt.u32.totalorder %s1082_s7, %s1300_s0  ;;  %p919_p1 = scmp.lt.u32.totalorder %s917_s15, %s912_s12 }
  0x13   : > { %p915_p12 = pnand %p914_p11, %p913_p10  ;;  %p921_p3 = scmp.lt.u32.totalorder %s912_s12, %s1082_s7 }
  0x14   : > { %p920_p2 = por %p919_p1, %p918_p0 }
  0x15   : > { %p916_p13 = pneg %p915_p12 }
  0x16   : > { %p922_p4 = por %p921_p3, %p920_p2 }
  0x18   : > { %p923_p5 = pnand %p922_p4, %p916_p13 }
  0x1a   : > { %926 = shalt.err (!%p923_p5)
}
  0x1b   : > { %s927_s24 = scalar_lea.vmem %s1090_s9, 8192  ;;  %s996_s25 = smov [#allocation5]  }
  0x1c   : > { %p928_p6 = scmp.ne.s32.totalorder %s1090_s9, %s927_s24  ;;  %s932_s28 = sshll.u32 %s996_s25, 4  ;;  %s933_s28 = int_to_ptr.vmem [resolvable:$false] %s932_s28 }
  0x1d   : > { %s934_s29 = scalar_lea.vmem %s933_s28, 16384  ;;  %p935_p12 = scmp.lt.s32.totalorder %s1090_s9, %s933_s28 }
  0x1e   : > { %p930_p8 = pnand %p928_p6, %p914_p11  ;;  %p936_p0 = scmp.lt.s32.totalorder %s934_s29, %s927_s24 }
  0x20   : > { %p931_p10 = pneg %p930_p8  ;;  %p937_p1 = por %p936_p0, %p935_p12 }
  0x22   : > { %p938_p2 = pnand %p937_p1, %p931_p10 }
  0x24   : > { %941 = shalt.err (!%p938_p2)
}
  0x25   : > { %s997_s30 = smov 128   ;;  %s998_s5 = smov 8  }
  0x26   : > { %845 = dma.hbm_to_vmem [thread:$0]  (!%p1086_p9), %s1082_s7, 8192, %s1090_s9, %s1092_s11, %s997_s30, %s997_s30, %s998_s5  }
  0x27   : > { %p831_p11 = scmp.ge.s32.totalorder %s994_s20, 1  ;;  %p171_p13 = scmp.lt.s32.totalorder %s994_s20, 3 }
  0x29   : > { %p172_p3 = pnand %p831_p11, %p171_p13 }
  0x2a   : > { %s177_s6 = sand.u32 (!%p172_p3), 1, %s978_s16  }
  0x2b   : > { %175 = sbr.rel (%p172_p3) target bundleno = 563 (0x233), region = 32  ;;  %s832_s8 = sshll.u32 (!%p172_p3), %s177_s6, 9 }
  0x2c   : > { %s178_s12 = scalar_lea.sflag (!%p172_p3), [#allocation6], %s177_s6  ;;  %s1123_s13 = scalar_lea.vmem (!%p172_p3), [#allocation5], %s832_s8 }
  0x32   : > { %967 = dma.done.wait (%p1069_p7), %s178_s12, 8192  }
  0x33   : > { %969 = vsyncadd (%p1069_p7), %s178_s12, 4294959104  ;;  %p205_p4 = scmp.lt.s32.totalorder %s986_s18, 1  ;;  %v232_v0 = vld [vmem:[%s1301_s1] sm:$0xf]  ;;  %v234_v1 = vld [vmem:[%s1301_s1 + $0x8] sm:$0xf] }
  0x34   : > { %v236_v2 = vld [vmem:[%s1301_s1 + $0x4] sm:$0xf]  ;;  %233 = vst [vmem:[#allocation3] sm:$0xf] %v232_v0  ;;  %235 = vst [vmem:[#allocation3 + $0x4] sm:$0xf] %v234_v1 }
  0x35   : > { %s1316_s18 = smov (!%p205_p4, %s986_s18), 1  ;;  %237 = vst [vmem:[#allocation3 + $0x8] sm:$0xf] %v236_v2  ;;  %v238_v3 = vld [vmem:[%s1301_s1 + $0xc] sm:$0xff]   ;;  %v242_v4 = vld [vmem:[%s1301_s1 + $0x18] sm:$0xf] }
  0x36   : > { %s833_s7 = sshll.u32 %s1316_s18, 3  ;;  %v244_v5 = vld [vmem:[%s1301_s1 + $0x14] sm:$0xf]  ;;  %239 = vst [vmem:[#allocation3 + $0xc] sm:$0xff] %v238_v3   ;;  %243 = vst [vmem:[#allocation3 + $0x14] sm:$0xf] %v242_v4 }
  0x37   : > { %s1134_s11 = scalar_lea.vmem %s1304_s4, %s833_s7  ;;  %245 = vst [vmem:[#allocation3 + $0x18] sm:$0xf] %v244_v5  ;;  %v246_v6 = vld [vmem:[%s1301_s1 + $0x1c] sm:$0xff]   ;;  %v250_v7 = vld [vmem:[%s1301_s1 + $0x28] sm:$0xf]  ;;  %v254_v9 = vld [vmem:[%s1301_s1 + $0x2c] sm:$0xff]  }
  0x38   : > { %v252_v8 = vld [vmem:[%s1301_s1 + $0x24] sm:$0xf]  ;;  %247 = vst [vmem:[#allocation3 + $0x1c] sm:$0xff] %v246_v6   ;;  %251 = vst [vmem:[#allocation3 + $0x24] sm:$0xf] %v250_v7  ;;  %v262_v12 = vld [vmem:[%s1301_s1 + $0x3c] sm:$0xff]  }
  0x39   : > { %253 = vst [vmem:[#allocation3 + $0x28] sm:$0xf] %v252_v8  ;;  %v258_v10 = vld [vmem:[%s1301_s1 + $0x38] sm:$0xf]  ;;  %v260_v11 = vld [vmem:[%s1301_s1 + $0x34] sm:$0xf] }
  0x3a   : > { %255 = vst [vmem:[#allocation3 + $0x2c] sm:$0xff] %v254_v9   ;;  %259 = vst [vmem:[#allocation3 + $0x34] sm:$0xf] %v258_v10  ;;  %v266_v13 = vld [vmem:[%s1301_s1 + $0x48] sm:$0xf]  ;;  %v270_v15 = vld [vmem:[%s1301_s1 + $0x4c] sm:$0xff]  }
  0x3b   : > { %261 = vst [vmem:[#allocation3 + $0x38] sm:$0xf] %v260_v11  ;;  %v268_v14 = vld [vmem:[%s1301_s1 + $0x44] sm:$0xf]  ;;  %263 = vst [vmem:[#allocation3 + $0x3c] sm:$0xff] %v262_v12   ;;  %v278_v18 = vld [vmem:[%s1301_s1 + $0x5c] sm:$0xff]  }
  0x3c   : > { %267 = vst [vmem:[#allocation3 + $0x44] sm:$0xf] %v266_v13  ;;  %269 = vst [vmem:[#allocation3 + $0x48] sm:$0xf] %v268_v14  ;;  %v274_v16 = vld [vmem:[%s1301_s1 + $0x58] sm:$0xf] }
  0x3d   : > { %v276_v17 = vld [vmem:[%s1301_s1 + $0x54] sm:$0xf]  ;;  %271 = vst [vmem:[#allocation3 + $0x4c] sm:$0xff] %v270_v15   ;;  %275 = vst [vmem:[#allocation3 + $0x54] sm:$0xf] %v274_v16  ;;  %v286_v21 = vld [vmem:[%s1301_s1 + $0x6c] sm:$0xff]  }
  0x3e   : > { %277 = vst [vmem:[#allocation3 + $0x58] sm:$0xf] %v276_v17  ;;  %v282_v19 = vld [vmem:[%s1301_s1 + $0x68] sm:$0xf]  ;;  %v284_v20 = vld [vmem:[%s1301_s1 + $0x64] sm:$0xf] }
  0x3f   : > { %279 = vst [vmem:[#allocation3 + $0x5c] sm:$0xff] %v278_v18   ;;  %283 = vst [vmem:[#allocation3 + $0x64] sm:$0xf] %v282_v19  ;;  %v290_v22 = vld [vmem:[%s1301_s1 + $0x78] sm:$0xf] }
  0x40   : > { %285 = vst [vmem:[#allocation3 + $0x68] sm:$0xf] %v284_v20  ;;  %v292_v23 = vld [vmem:[%s1301_s1 + $0x74] sm:$0xf]  ;;  %287 = vst [vmem:[#allocation3 + $0x6c] sm:$0xff] %v286_v21  }
  0x41   : > { %291 = vst [vmem:[#allocation3 + $0x74] sm:$0xf] %v290_v22  ;;  %293 = vst [vmem:[#allocation3 + $0x78] sm:$0xf] %v292_v23  ;;  %v294_v24 = vld [vmem:[%s1301_s1 + $0x7c] sm:$0xf] }
  0x42   : > { %295 = vst [vmem:[#allocation3 + $0x7c] sm:$0xf] %v294_v24 }
  0x43   : > { %390 = vsyncadd [#allocation4], 2048  ;;  %v391_v25 = vld [vmem:[%s1123_s13] sm:$0xff]  ;;  %v392_v26 = vld [vmem:[%s1123_s13 + $0x8] sm:$0xff]  ;;  %vm568_vm0 = vcmask 1041409   ;;  %vm570_vm1 = vcmask 1042434  }
  0x44   : > { %v393_v27 = vld [vmem:[%s1123_s13 + $0x10] sm:$0xff]  ;;  %v456_v28 = vadd.f32 %v392_v26, %v391_v25  ;;  %v394_v29 = vld [vmem:[%s1123_s13 + $0x18] sm:$0xff]  ;;  %v399_v30 = vld [vmem:[%s1123_s13 + $0x40] sm:$0xff]  ;;  %vm572_vm2 = vcmask 1043459   ;;  %vm574_vm3 = vcmask 1044484   ;;  %vm576_vm4 = vcmask 1045509  }
  0x45   : > { %v400_v31 = vld [vmem:[%s1123_s13 + $0x48] sm:$0xff]  ;;  %v401_v32 = vld [vmem:[%s1123_s13 + $0x50] sm:$0xff]  ;;  %v395_v34 = vld [vmem:[%s1123_s13 + $0x20] sm:$0xff]  ;;  %vm578_vm5 = vcmask 1046534   ;;  %vm580_vm6 = vcmask 1047559  }
  0x46   : > { %v457_v33 = vadd.f32 %v456_v28, %v393_v27  ;;  %v469_v35 = vadd.f32 %v400_v31, %v399_v30  ;;  %v402_v36 = vld [vmem:[%s1123_s13 + $0x58] sm:$0xff]  ;;  %v407_v37 = vld [vmem:[%s1123_s13 + $0x80] sm:$0xff]  ;;  %v396_v39 = vld [vmem:[%s1123_s13 + $0x28] sm:$0xff] }
  0x47   : > { %v408_v40 = vld [vmem:[%s1123_s13 + $0x88] sm:$0xff]  ;;  %v409_v41 = vld [vmem:[%s1123_s13 + $0x90] sm:$0xff]  ;;  %v403_v44 = vld [vmem:[%s1123_s13 + $0x60] sm:$0xff] }
  0x48   : > { %v458_v38 = vadd.f32 %v457_v33, %v394_v29  ;;  %v470_v42 = vadd.f32 %v469_v35, %v401_v32  ;;  %v397_v43 = vld [vmem:[%s1123_s13 + $0x30] sm:$0xff]  ;;  %v482_v46 = vadd.f32 %v408_v40, %v407_v37  ;;  %v410_v47 = vld [vmem:[%s1123_s13 + $0x98] sm:$0xff]  ;;  %v415_v48 = vld [vmem:[%s1123_s13 + $0xc0] sm:$0xff] }
  0x49   : > { %v416_v49 = vld [vmem:[%s1123_s13 + $0xc8] sm:$0xff]  ;;  %v398_v51 = vld [vmem:[%s1123_s13 + $0x38] sm:$0xff]  ;;  %v417_v53 = vld [vmem:[%s1123_s13 + $0xd0] sm:$0xff] }
  0x4a   : > { %v459_v45 = vadd.f32 %v458_v38, %v395_v34  ;;  %v471_v50 = vadd.f32 %v470_v42, %v402_v36  ;;  %v404_v52 = vld [vmem:[%s1123_s13 + $0x68] sm:$0xff]  ;;  %v483_v55 = vadd.f32 %v482_v46, %v409_v41  ;;  %v495_v56 = vadd.f32 %v416_v49, %v415_v48  ;;  %v405_v57 = vld [vmem:[%s1123_s13 + $0x70] sm:$0xff]  ;;  %v411_v58 = vld [vmem:[%s1123_s13 + $0xa0] sm:$0xff] }
  0x4b   : > { %v418_v59 = vld [vmem:[%s1123_s13 + $0xd8] sm:$0xff]  ;;  %v423_v61 = vld [vmem:[%s1123_s13 + $0x100] sm:$0xff]  ;;  %v424_v62 = vld [vmem:[%s1123_s13 + $0x108] sm:$0xff] }
  0x4c   : > { %v460_v54 = vadd.f32 %v459_v45, %v396_v39  ;;  %v472_v60 = vadd.f32 %v471_v50, %v403_v44  ;;  %v425_v63 = vld [vmem:[%s1123_s13 + $0x110] sm:$0xff]  ;;  %v484_v1 = vadd.f32 %v483_v55, %v410_v47  ;;  %v496_v2 = vadd.f32 %v495_v56, %v417_v53  ;;  %v406_v3 = vld [vmem:[%s1123_s13 + $0x78] sm:$0xff]  ;;  %v412_v4 = vld [vmem:[%s1123_s13 + $0xa8] sm:$0xff] }
  0x4d   : > { %v419_v5 = vld [vmem:[%s1123_s13 + $0xe0] sm:$0xff]  ;;  %v508_v7 = vadd.f32 %v424_v62, %v423_v61  ;;  %v413_v8 = vld [vmem:[%s1123_s13 + $0xb0] sm:$0xff]  ;;  %v426_v9 = vld [vmem:[%s1123_s13 + $0x118] sm:$0xff] }
  0x4e   : > { %v461_v0 = vadd.f32 %v460_v54, %v397_v43  ;;  %v473_v6 = vadd.f32 %v472_v60, %v404_v52  ;;  %v431_v10 = vld [vmem:[%s1123_s13 + $0x140] sm:$0xff]  ;;  %v485_v12 = vadd.f32 %v484_v1, %v411_v58  ;;  %v497_v13 = vadd.f32 %v496_v2, %v418_v59  ;;  %v420_v14 = vld [vmem:[%s1123_s13 + $0xe8] sm:$0xff]  ;;  %v433_v16 = vld [vmem:[%s1123_s13 + $0x150] sm:$0xff] }
  0x4f   : > { %v432_v15 = vld [vmem:[%s1123_s13 + $0x148] sm:$0xff]  ;;  %v509_v18 = vadd.f32 %v508_v7, %v425_v63  ;;  %v414_v19 = vld [vmem:[%s1123_s13 + $0xb8] sm:$0xff]  ;;  %v421_v20 = vld [vmem:[%s1123_s13 + $0xf0] sm:$0xff] }
  0x50   : > { %v462_v11 = vadd.f32 %v461_v0, %v398_v51  ;;  %v474_v17 = vadd.f32 %v473_v6, %v405_v57  ;;  %v427_v21 = vld [vmem:[%s1123_s13 + $0x120] sm:$0xff]  ;;  %v486_v23 = vadd.f32 %v485_v12, %v412_v4  ;;  %v498_v24 = vadd.f32 %v497_v13, %v419_v5  ;;  %v434_v26 = vld [vmem:[%s1123_s13 + $0x158] sm:$0xff]  ;;  %v440_v28 = vld [vmem:[%s1123_s13 + $0x188] sm:$0xff] }
  0x51   : > { %v521_v25 = vadd.f32 %v432_v15, %v431_v10  ;;  %v439_v27 = vld [vmem:[%s1123_s13 + $0x180] sm:$0xff]  ;;  %v510_v30 = vadd.f32 %v509_v18, %v426_v9  ;;  %v422_v31 = vld [vmem:[%s1123_s13 + $0xf8] sm:$0xff]  ;;  %v428_v32 = vld [vmem:[%s1123_s13 + $0x128] sm:$0xff] }
  0x52   : > { %v463_v22 = vrot.slane %v462_v11, 4  ;;  %v475_v29 = vadd.f32 %v474_v17, %v406_v3  ;;  %v441_v33 = vld [vmem:[%s1123_s13 + $0x190] sm:$0xff]  ;;  %v487_v35 = vadd.f32 %v486_v23, %v413_v8  ;;  %v499_v36 = vadd.f32 %v498_v24, %v420_v14  ;;  %v435_v39 = vld [vmem:[%s1123_s13 + $0x160] sm:$0xff]  ;;  %v442_v40 = vld [vmem:[%s1123_s13 + $0x198] sm:$0xff] }
  0x53   : > { %v522_v37 = vadd.f32 %v521_v25, %v433_v16  ;;  %v429_v38 = vld [vmem:[%s1123_s13 + $0x130] sm:$0xff]  ;;  %v511_v42 = vadd.f32 %v510_v30, %v427_v21  ;;  %v534_v43 = vadd.f32 %v440_v28, %v439_v27  ;;  %v447_v44 = vld [vmem:[%s1123_s13 + $0x1c0] sm:$0xff]  ;;  %v448_v45 = vld [vmem:[%s1123_s13 + $0x1c8] sm:$0xff] }
  0x54   : > { %v464_v34 = vadd.f32 %v463_v22, %v462_v11  ;;  %v476_v41 = vrot.slane %v475_v29, 4  ;;  %v449_v46 = vld [vmem:[%s1123_s13 + $0x1d0] sm:$0xff]  ;;  %v488_v48 = vadd.f32 %v487_v35, %v414_v19  ;;  %v500_v49 = vadd.f32 %v499_v36, %v421_v20  ;;  %v436_v51 = vld [vmem:[%s1123_s13 + $0x168] sm:$0xff]  ;;  %v430_v56 = vld [vmem:[%s1123_s13 + $0x138] sm:$0xff] }
  0x55   : > { %v523_v50 = vadd.f32 %v522_v37, %v434_v26  ;;  %v512_v53 = vadd.f32 %v511_v42, %v428_v32  ;;  %v535_v54 = vadd.f32 %v534_v43, %v441_v33  ;;  %v547_v55 = vadd.f32 %v448_v45, %v447_v44  ;;  %v443_v57 = vld [vmem:[%s1123_s13 + $0x1a0] sm:$0xff]  ;;  %v450_v58 = vld [vmem:[%s1123_s13 + $0x1d8] sm:$0xff]  ;;  %v437_v63 = vld [vmem:[%s1123_s13 + $0x170] sm:$0xff] }
  0x56   : > { %v465_v47 = vrot.slane %v464_v34, 2  ;;  %v477_v52 = vadd.f32 %v476_v41, %v475_v29  ;;  %v489_v60 = vrot.slane %v488_v48, 4  ;;  %v501_v61 = vadd.f32 %v500_v49, %v422_v31  ;;  %v444_v4 = vld [vmem:[%s1123_s13 + $0x1a8] sm:$0xff]  ;;  %v451_v5 = vld [vmem:[%s1123_s13 + $0x1e0] sm:$0xff]  ;;  %v438_v10 = vld [vmem:[%s1123_s13 + $0x178] sm:$0xff] }
  0x57   : > { %v524_v62 = vadd.f32 %v523_v50, %v435_v39  ;;  %v513_v1 = vadd.f32 %v512_v53, %v429_v38  ;;  %v536_v2 = vadd.f32 %v535_v54, %v442_v40  ;;  %v548_v3 = vadd.f32 %v547_v55, %v449_v46  ;;  %v445_v15 = vld [vmem:[%s1123_s13 + $0x1b0] sm:$0xff]  ;;  %v452_v16 = vld [vmem:[%s1123_s13 + $0x1e8] sm:$0xff]  ;;  %v446_v25 = vld [vmem:[%s1123_s13 + $0x1b8] sm:$0xff] }
  0x58   : > { %v466_v59 = vadd.f32 %v465_v47, %v464_v34  ;;  %v478_v0 = vrot.slane %v477_v52, 2  ;;  %v490_v7 = vadd.f32 %v489_v60, %v488_v48  ;;  %v502_v8 = vrot.slane %v501_v61, 4  ;;  %v453_v26 = vld [vmem:[%s1123_s13 + $0x1f0] sm:$0xff]  ;;  %v454_v34 = vld [vmem:[%s1123_s13 + $0x1f8] sm:$0xff] }
  0x59   : > { %v525_v9 = vadd.f32 %v524_v62, %v436_v51  ;;  %v514_v12 = vadd.f32 %v513_v1, %v430_v56  ;;  %v537_v13 = vadd.f32 %v536_v2, %v443_v57  ;;  %v549_v14 = vadd.f32 %v548_v3, %v450_v58 }
  0x5a   : > { %v467_v6 = vrot.slane %v466_v59, 1  ;;  %v479_v11 = vadd.f32 %v478_v0, %v477_v52  ;;  %v491_v18 = vrot.slane %v490_v7, 2  ;;  %v503_v19 = vadd.f32 %v502_v8, %v501_v61 }
  0x5b   : > { %v526_v20 = vadd.f32 %v525_v9, %v437_v63  ;;  %v515_v22 = vrot.slane %v514_v12, 4  ;;  %v538_v23 = vadd.f32 %v537_v13, %v444_v4  ;;  %v550_v24 = vadd.f32 %v549_v14, %v451_v5 }
  0x5c   : > { %v468_v17 = vadd.f32 %v467_v6, %v466_v59  ;;  %v480_v21 = vrot.slane %v479_v11, 1  ;;  %v492_v27 = vadd.f32 %v491_v18, %v490_v7  ;;  %v504_v28 = vrot.slane %v503_v19, 2 }
  0x5d   : > { %v527_v29 = vadd.f32 %v526_v20, %v438_v10  ;;  %v516_v31 = vadd.f32 %v515_v22, %v514_v12  ;;  %v539_v32 = vadd.f32 %v538_v23, %v445_v15  ;;  %v551_v33 = vadd.f32 %v550_v24, %v452_v16 }
  0x5e   : > { %v481_v30 = vadd.f32 %v480_v21, %v479_v11  ;;  %v493_v35 = vrot.slane %v492_v27, 1  ;;  %v505_v36 = vadd.f32 %v504_v28, %v503_v19 }
  0x5f   : > { %v528_v37 = vrot.slane %v527_v29, 4  ;;  %v517_v38 = vrot.slane %v516_v31, 2  ;;  %v540_v39 = vadd.f32 %v539_v32, %v446_v25  ;;  %v552_v40 = vadd.f32 %v551_v33, %v453_v26 }
  0x60   : > { %v569_v41 = vsel %vm568_vm0, %v481_v30, %v468_v17  ;;  %v494_v42 = vadd.f32 %v493_v35, %v492_v27  ;;  %v506_v43 = vrot.slane %v505_v36, 1 }
  0x61   : > { %v529_v44 = vadd.f32 %v528_v37, %v527_v29  ;;  %v518_v45 = vadd.f32 %v517_v38, %v516_v31  ;;  %v541_v46 = vrot.slane %v540_v39, 4  ;;  %v553_v47 = vadd.f32 %v552_v40, %v454_v34 }
  0x62   : > { %v507_v48 = vadd.f32 %v506_v43, %v505_v36  ;;  %v571_v50 = vsel %vm570_vm1, %v494_v42, %v569_v41 }
  0x63   : > { %v530_v49 = vrot.slane %v529_v44, 2  ;;  %v519_v51 = vrot.slane %v518_v45, 1  ;;  %v542_v52 = vadd.f32 %v541_v46, %v540_v39  ;;  %v554_v53 = vrot.slane %v553_v47, 4 }
  0x64   : > { %v573_v55 = vsel %vm572_vm2, %v507_v48, %v571_v50 }
  0x65   : > { %v531_v54 = vadd.f32 %v530_v49, %v529_v44  ;;  %v520_v56 = vadd.f32 %v519_v51, %v518_v45  ;;  %v543_v57 = vrot.slane %v542_v52, 2  ;;  %v555_v58 = vadd.f32 %v554_v53, %v553_v47 }
  0x67   : > { %v532_v59 = vrot.slane %v531_v54, 1  ;;  %v544_v60 = vadd.f32 %v543_v57, %v542_v52  ;;  %v556_v61 = vrot.slane %v555_v58, 2  ;;  %v575_v62 = vsel %vm574_vm3, %v520_v56, %v573_v55 }
  0x69   : > { %v533_v63 = vadd.f32 %v532_v59, %v531_v54  ;;  %v545_v0 = vrot.slane %v544_v60, 1  ;;  %v557_v1 = vadd.f32 %v556_v61, %v555_v58 }
  0x6b   : > { %v577_v2 = vsel %vm576_vm4, %v533_v63, %v575_v62  ;;  %v546_v3 = vadd.f32 %v545_v0, %v544_v60  ;;  %v558_v4 = vrot.slane %v557_v1, 1 }
  0x6d   : > { %v559_v5 = vadd.f32 %v558_v4, %v557_v1  ;;  %v579_v6 = vsel %vm578_vm5, %v546_v3, %v577_v2 }
  0x6f   : > { %v581_v7 = vsel %vm580_vm6, %v559_v5, %v579_v6 }
  0x70   : > { %970 = dma.done.wait [#allocation4], 2048 }
  0x71   : > { %971 = vsyncadd [#allocation4], 4294965248  ;;  %v999_v8 = vmov 0   ;;  %v596_v9 = vld [vmem:[#allocation3 + $0x8] sm:$0xff]  ;;  %v595_v10 = vld [vmem:[#allocation3] sm:$0xff]  ;;  %v593_v24 = vmul.f32 0.015625, %v581_v7  ;;  %v613_v27 = vlaneseq }
  0x72   : > { %655 = vmatprep.mubr.bf16.mxu0 %v999_v8  ;;  %899 = vset.pattern.permute.xlu0 %v999_v8  ;;  %v598_v11 = vld [vmem:[#allocation3 + $0x18] sm:$0xff]  ;;  %v597_v12 = vld [vmem:[#allocation3 + $0x10] sm:$0xff]  ;;  %v600_v13 = vld [vmem:[#allocation3 + $0x28] sm:$0xff] }
  0x73   : > { %623 = vmatprep.subr.bf16.mxu0 %v596_v9  ;;  %v599_v14 = vld [vmem:[#allocation3 + $0x20] sm:$0xff]  ;;  %v602_v15 = vld [vmem:[#allocation3 + $0x38] sm:$0xff]  ;;  %v601_v16 = vld [vmem:[#allocation3 + $0x30] sm:$0xff]  ;;  %v594_v26 = vpack.c.bf16 %v593_v24, %v593_v24  ;;  %v614_v28 = vshrl.u32 %v613_v27, 7  ;;  %v710_v62 = vand.u32 127, %v613_v27 }
  0x74   : > { %624 = vmatpush1.bf16.msra.mxu0 %v595_v10  ;;  %v604_v17 = vld [vmem:[#allocation3 + $0x48] sm:$0xff]  ;;  %v603_v18 = vld [vmem:[#allocation3 + $0x40] sm:$0xff]  ;;  %v606_v19 = vld [vmem:[#allocation3 + $0x58] sm:$0xff]  ;;  %v1000_v10 = vmov 0.0  }
  0x75   : > { %625 = vmatprep.subr.bf16.mxu0 %v598_v11  ;;  %v605_v20 = vld [vmem:[#allocation3 + $0x50] sm:$0xff]  ;;  %v608_v21 = vld [vmem:[#allocation3 + $0x68] sm:$0xff]  ;;  %v607_v22 = vld [vmem:[#allocation3 + $0x60] sm:$0xff]  ;;  %v615_v29 = vsub.s32 0, %v614_v28  ;;  %v619_v31 = vsub.s32 1, %v614_v28  ;;  %vm711_vm7 = vcmp.eq.s32.totalorder %v710_v62, 0 }
  0x76   : > { %v610_v23 = vld [vmem:[#allocation3 + $0x78] sm:$0xff]  ;;  %v609_v25 = vld [vmem:[#allocation3 + $0x70] sm:$0xff]  ;;  %v611_v30 = vld [vmem:[%s1302_s2] sm:$0x3]  ;;  %vm713_vm8 = vcmp.eq.s32.totalorder %v710_v62, 1  ;;  %vm715_vm9 = vcmp.eq.s32.totalorder %v710_v62, 2 }
  0x77   : > { %v616_v32 = vrot.slane %v611_v30, %v615_v29  ;;  %v620_v33 = vrot.slane %v611_v30, %v619_v31  ;;  %v666_v34 = vld [vmem:[%s1303_s3] sm:$0x3]  ;;  %vm722_vm11 = vcmp.eq.s32.totalorder %v710_v62, 3  ;;  %vm724_vm12 = vcmp.eq.s32.totalorder %v710_v62, 4 }
  0x78   : > { %626 = vmatpush1.bf16.msra.mxu0 %v597_v12  ;;  %v671_v38 = vrot.slane %v666_v34, %v615_v29  ;;  %v675_v41 = vrot.slane %v666_v34, %v619_v31 }
  0x79   : > { %627 = vmatprep.subr.bf16.mxu0 %v600_v13 }
  0x7c   : > { %628 = vmatpush1.bf16.msra.mxu0 %v599_v14 }
  0x7d   : > { %629 = vmatprep.subr.bf16.mxu0 %v602_v15 }
  0x80   : > { %630 = vmatpush1.bf16.msra.mxu0 %v601_v16 }
  0x81   : > { %631 = vmatprep.subr.bf16.mxu0 %v604_v17 }
  0x84   : > { %632 = vmatpush1.bf16.msra.mxu0 %v603_v18 }
  0x85   : > { %633 = vmatprep.subr.bf16.mxu0 %v606_v19 }
  0x88   : > { %634 = vmatpush1.bf16.msra.mxu0 %v605_v20 }
  0x89   : > { %635 = vmatprep.subr.bf16.mxu0 %v608_v21 }
  0x8c   : > { %636 = vmatpush1.bf16.msra.mxu0 %v607_v22 }
  0x8d   : > { %637 = vmatprep.subr.bf16.mxu0 %v610_v23 }
  0x90   : > { %638 = vmatpush1.bf16.msra.mxu0 %v609_v25 }
  0x93   : > { %656 = vmatmul.mubr.bf16.vlgmr.msra.gmra.mrb[0].mxu0 %v594_v26 }
 0x166   : > { %v657_v35 = vpop.f32.mrb[0].mxu0 }
 0x167   : > { %v658_v36 = vadd.f32 %v657_v35, %v616_v32  ;;  %v659_v37 = vpop.f32.mrb[1].mxu0 }
 0x168   : > { %v660_v39 = vadd.f32 %v659_v37, %v620_v33  ;;  %v661_v40 = vpop.f32.mrb[2].mxu0 }
 0x169   : > { %v664_v42 = vmax.f32 %v658_v36, 0.0  ;;  %v662_v43 = vpop.f32.mrb[3].mxu0 }
 0x16a   : > { %v665_v44 = vmax.f32 %v660_v39, 0.0  ;;  %v690_v45 = vsub.f32 0.0, %v660_v39 }
 0x16b   : > { %v678_v46 = vmul.f32 %v671_v38, %v664_v42 }
 0x16c   : > { %v691_v47 = vmul.f32 1.442695, %v690_v45  ;;  %v679_v48 = vmul.f32 %v675_v41, %v665_v44 }
 0x16e   : > { %900 = vpow2.f32 %v691_v47  ;;  %v680_v49 = vadd.f32 %v679_v48, %v678_v46 }
 0x170   : > { %681 = vadd.xlane.f32.xlu0 %v680_v49 }
 0x178   : > { %v901_v50 = vpop.eup %900 }
 0x179   : > { %v693_v51 = vadd.f32 1.0, %v901_v50 }
 0x17b   : > { %902 = vrcp.f32 %v693_v51 }
 0x185   : > { %v903_v52 = vpop.eup %902 }
 0x186   : > { %718 = vperm.xlu0 %899, %v903_v52  }
 0x1fd   : > { %v682_v53 = vpop.xlane.xlu0 %681 }
 0x1fe   : > { %v683_v54 = vsub.f32 0.0, %v682_v53 }
 0x200   : > { %v684_v55 = vmul.f32 1.442695, %v683_v54 }
 0x202   : > { %904 = vpow2.f32 %v684_v55 }
 0x205   : > { %v719_v7 = vpop.permute.xlu0 %718 }
 0x20c   : > { %v905_v56 = vpop.eup %904 }
 0x20d   : > { %v686_v57 = vadd.f32 1.0, %v905_v56 }
 0x20f   : > { %906 = vrcp.f32 %v686_v57 }
 0x219   : > { %v907_v58 = vpop.eup %906 }
 0x21a   : > { %v689_v59 = vsub.f32 1.0, %v907_v58  ;;  %v703_v60 = vadd.f32 1e-08, %v907_v58  ;;  %vm696_vm10 = vcmp.gt.f32.partialorder %v907_v58, 0.5 }
 0x21b   : > { %v834_v11 = vsel %vm696_vm10, 1.0, %v1000_v10 }
 0x21c   : > { %v699_v61 = vadd.f32 1e-08, %v689_v59  ;;  %908 = vlog2.f32 %v703_v60  ;;  %v712_v1 = vsel %vm711_vm7, %v689_v59, 0.0 }
 0x21d   : > { %v714_v4 = vsel %vm713_vm8, %v907_v58, %v712_v1 }
 0x21e   : > { %910 = vlog2.f32 %v699_v61  ;;  %v721_v9 = vsel %vm715_vm9, %v719_v7, %v714_v4 }
 0x21f   : > { %v723_v13 = vsel %vm722_vm11, %v834_v11, %v721_v9 }
 0x226   : > { %v909_v63 = vpop.eup %908 }
 0x227   : > { %v705_v0 = vmul.f32 0.6931472, %v909_v63 }
 0x228   : > { %v911_v2 = vpop.eup %910 }
 0x229   : > { %v701_v3 = vmul.f32 0.6931472, %v911_v2  ;;  %v706_v6 = vmul.f32 %v907_v58, %v705_v0 }
 0x22b   : > { %v702_v5 = vmul.f32 %v701_v3, %v689_v59 }
 0x22d   : > { %v707_v8 = vadd.f32 %v706_v6, %v702_v5 }
 0x22f   : > { %v708_v12 = vsub.f32 0.0, %v707_v8 }
 0x231   : > { %v725_v14 = vsel %vm724_vm12, %v708_v12, %v723_v13 }
 0x232   : > { %726 = vst [vmem:[%s1134_s11] sm:$0xff] %v725_v14 }
 0x233 PF: > { %s17_s20 = sadd.s32 1, %s994_s20   ;;  %s1308_s15 = smov %s978_s16 }
 0x234   : > { %p14_p7 = scmp.ge.s32.totalorder %s17_s20, 4   ;;  %s1309_s16 = smov %s982_s17 }
 0x235   : > { %s1310_s17 = smov %s1075_s27  ;;  %s1311_s18 = smov %s990_s19 }
 0x236   : > { %s1312_s19 = smov %s1314_s22  ;;  %16 = sbr.rel (!%p14_p7) target bundleno = 4 (0x4), region = 131 }
 0x23d   :  { %746 = vsyncpa [#allocation6], 1 }
 0x23e   :  { %748 = vsyncpa [#allocation6 + $0x1], 1 }
 0x23f   :  { %749 = vsyncmov [#allocation4] }
 0x242   :  { %s750_s11 = vpop.sfrf %749 }
 0x243   :  { %p837_p9 = scmp.ne.s32.totalorder %s750_s11, 0 }
 0x245   :  { %754 = shalt.err (%p837_p9)  }

</bundles_post_ra>
